<compile_context>
chip_gen: v7x
topology: tpu7x:2x2x1
jax: 0.10.0
libtpu: 0.0.40
codegen_flags: <defaults>
</compile_context>

<pallas_src>
import functools

import jax
import jax.numpy as jnp
from jax.experimental import pallas as pl
from jax.experimental.pallas import tpu as pltpu


def _gru_fused_kernel(zc_ref, hc_ref, w_ref, b_ref, out_ref, *, hidden_channels):
    """Fused GRU cell: one [Bt, C+H] @ [C+H, 4H] MXU pass.

    Packed gate layout along the 4H lane axis:
      [0 :  H] -> i_r + h_r   (b_ih_r + b_hh_r folded)
      [H : 2H] -> i_z + h_z   (b_ih_z + b_hh_z folded)
      [2H: 3H] -> i_n         (b_ih_n folded)
      [3H: 4H] -> h_n         (b_hh_n folded)
    """
    H = hidden_channels
    zc = zc_ref[...].astype(jnp.float32)          # (Bt, C+H), h part pre-clipped
    hc = hc_ref[...].astype(jnp.float32)          # (Bt, H), clipped hidden state

    g = jnp.dot(zc, w_ref[...], preferred_element_type=jnp.float32) + b_ref[...]

    r = jax.nn.sigmoid(g[:, :H])
    u = jax.nn.sigmoid(g[:, H:2 * H])
    n = jnp.tanh(g[:, 2 * H:3 * H] + r * g[:, 3 * H:])
    out_ref[...] = ((1.0 - u) * n + u * hc).astype(out_ref.dtype)


def _pack_gru_weights(w_ih, w_hh, b_ih, b_hh, C, H):
    """Pack GRUCell weights into a single (C+H, 4H) matrix + (1, 4H) bias."""
    w = jnp.zeros((C + H, 4 * H), jnp.float32)
    w = w.at[:C, 0:H].set(w_ih[:, 0:H])                 # r, input part
    w = w.at[C:, 0:H].set(w_hh[:, 0:H])                 # r, hidden part
    w = w.at[:C, H:2 * H].set(w_ih[:, H:2 * H])         # z, input part
    w = w.at[C:, H:2 * H].set(w_hh[:, H:2 * H])         # z, hidden part
    w = w.at[:C, 2 * H:3 * H].set(w_ih[:, 2 * H:3 * H])  # i_n (input only)
    w = w.at[C:, 3 * H:4 * H].set(w_hh[:, 2 * H:3 * H])  # h_n (hidden only)
    b = jnp.concatenate([
        b_ih[0:H] + b_hh[0:H],
        b_ih[H:2 * H] + b_hh[H:2 * H],
        b_ih[2 * H:3 * H],
        b_hh[2 * H:3 * H],
    ])
    return w, b.reshape(1, 4 * H)


@functools.partial(jax.jit, static_argnums=(5, 6))
def continuous_rnn_converter(z, w_ih, w_hh, b_ih, b_hh,
                             input_channels, hidden_channels):
    C, H = input_channels, hidden_channels
    B = z.shape[0]

    # Split / clip / concat in plain XLA (cheap, fused) so the kernel sees
    # lane-aligned inputs and never slices at lane offset C.
    x = z[:, :C]
    hc = jnp.clip(z[:, C:], -1.0, 1.0)
    zc = jnp.concatenate([x, hc], axis=-1)               # (B, C+H)

    w_packed, b_packed = _pack_gru_weights(w_ih, w_hh, b_ih, b_hh, C, H)

    # Batch tiling: one block for small B, parallel grid for large B.
    block_b = B
    if B > 512 and B % 8 == 0:
        for cand in range(512, 0, -8):
            if B % cand == 0:
                block_b = cand
                break
    grid = (B // block_b,)

    kernel = functools.partial(_gru_fused_kernel, hidden_channels=H)
    model_out = pl.pallas_call(
        kernel,
        out_shape=jax.ShapeDtypeStruct((B, H), jnp.float32),
        grid_spec=pltpu.PrefetchScalarGridSpec(
            num_scalar_prefetch=0,
            grid=grid,
            in_specs=[
                pl.BlockSpec((block_b, C + H), lambda i: (i, 0)),
                pl.BlockSpec((block_b, H), lambda i: (i, 0)),
                pl.BlockSpec((C + H, 4 * H), lambda i: (0, 0)),
                pl.BlockSpec((1, 4 * H), lambda i: (0, 0)),
            ],
            out_specs=pl.BlockSpec((block_b, H), lambda i: (i, 0)),
        ),
        compiler_params=pltpu.CompilerParams(
            dimension_semantics=("parallel",)),
    )(zc, hc, w_packed, b_packed)

    # Compose the mostly-constant output outside the kernel:
    #   out = out_base.repeat(B, 1, 1); out[:, C:, 0] = model_out
    base = jnp.zeros((C + H, C), jnp.float32)
    base = base.at[jnp.arange(C), jnp.arange(C)].set(1.0)
    out = jnp.broadcast_to(base[None], (B, C + H, C))
    out = out.at[:, C:, 0].set(model_out)
    return out


def _reference(z, w_ih, w_hh, b_ih, b_hh, C, H):
    x = z[:, :C]
    h = jnp.clip(z[:, C:], -1.0, 1.0)
    gi = x @ w_ih + b_ih
    gh = h @ w_hh + b_hh
    i_r, i_z, i_n = gi[:, :H], gi[:, H:2 * H], gi[:, 2 * H:]
    h_r, h_z, h_n = gh[:, :H], gh[:, H:2 * H], gh[:, 2 * H:]
    r = jax.nn.sigmoid(i_r + h_r)
    u = jax.nn.sigmoid(i_z + h_z)
    n = jnp.tanh(i_n + r * h_n)
    mo = (1.0 - u) * n + u * h
    B = z.shape[0]
    out = jnp.zeros((B, C + H, C), jnp.float32)
    out = out.at[:, jnp.arange(C), jnp.arange(C)].set(1.0)
    out = out.at[:, C:, 0].set(mo)
    return out


if __name__ == "__main__":
    B, C, H = 8, 4, 32     # batch, input_channels, hidden_channels

    key = jax.random.PRNGKey(0)
    k_z, k_wih, k_whh, k_bih, k_bhh = jax.random.split(key, 5)

    z = jax.random.normal(k_z, (B, C + H), jnp.float32)
    scale = 1.0 / jnp.sqrt(H)
    w_ih = jax.random.uniform(k_wih, (C, 3 * H), jnp.float32, -scale, scale)
    w_hh = jax.random.uniform(k_whh, (H, 3 * H), jnp.float32, -scale, scale)
    b_ih = jax.random.uniform(k_bih, (3 * H,), jnp.float32, -scale, scale)
    b_hh = jax.random.uniform(k_bhh, (3 * H,), jnp.float32, -scale, scale)

    out = continuous_rnn_converter(z, w_ih, w_hh, b_ih, b_hh, C, H)
    out = jax.block_until_ready(out)

    ref = _reference(z, w_ih, w_hh, b_ih, b_hh, C, H)
    assert out.shape == (B, C + H, C)
    assert jnp.allclose(out, ref, atol=1e-5, rtol=1e-5), "mismatch vs reference"

    print("KERNEL_OK")
</pallas_src>

<mosaic_0001>
module attributes {stable_mosaic.version = 11 : i64} {
  func.func @_gru_fused_kernel(%arg0: i32, %arg1: memref<8x36xf32, #tpu.memory_space<vmem>>, %arg2: memref<8x32xf32, #tpu.memory_space<vmem>>, %arg3: memref<36x128xf32, #tpu.memory_space<vmem>>, %arg4: memref<1x128xf32, #tpu.memory_space<vmem>>, %arg5: memref<8x32xf32, #tpu.memory_space<vmem>>) attributes {dimension_semantics = [#tpu.dimension_semantics<parallel>], iteration_bounds = array<i64: 1>, scalar_prefetch = 0 : i64, scratch_operands = 0 : i64, tpu.core_type = #tpu.core_type<tc>, window_params = [{transform_indices = @transform_0, window_bounds = array<i64: 8, 36>}, {transform_indices = @transform_1, window_bounds = array<i64: 8, 32>}, {pipeline_mode = #tpu.pipeline_mode<synchronous>, transform_indices = @transform_2, window_bounds = array<i64: 36, 128>}, {pipeline_mode = #tpu.pipeline_mode<synchronous>, transform_indices = @transform_3, window_bounds = array<i64: 1, 128>}, {transform_indices = @transform_4, window_bounds = array<i64: 8, 32>}]} {
    %c0 = arith.constant 0 : index
    %c0_0 = arith.constant 0 : index
    %0 = vector.load %arg1[%c0, %c0_0] : memref<8x36xf32, #tpu.memory_space<vmem>>, vector<8x36xf32>
    %c0_1 = arith.constant 0 : index
    %c0_2 = arith.constant 0 : index
    %1 = vector.load %arg2[%c0_1, %c0_2] : memref<8x32xf32, #tpu.memory_space<vmem>>, vector<8x32xf32>
    %c0_3 = arith.constant 0 : index
    %c0_4 = arith.constant 0 : index
    %2 = vector.load %arg3[%c0_3, %c0_4] : memref<36x128xf32, #tpu.memory_space<vmem>>, vector<36x128xf32>
    %cst = arith.constant dense<0.000000e+00> : vector<8x128xf32>
    %3 = tpu.matmul %0, %2, %cst {dimension_numbers = #tpu.dot_dimension_numbers<[1], [0], [0], [1], [0, 0, 1, 1], [], []>} : vector<8x36xf32>, vector<36x128xf32>, vector<8x128xf32> -> vector<8x128xf32>
    %c0_5 = arith.constant 0 : index
    %c0_6 = arith.constant 0 : index
    %4 = vector.load %arg4[%c0_5, %c0_6] : memref<1x128xf32, #tpu.memory_space<vmem>>, vector<1x128xf32>
    %5 = vector.broadcast %4 : vector<1x128xf32> to vector<8x128xf32>
    %6 = arith.addf %3, %5 : vector<8x128xf32>
    %7 = vector.extract_strided_slice %6 {offsets = [0, 0], sizes = [8, 32], strides = [1, 1]} : vector<8x128xf32> to vector<8x32xf32>
    %8 = arith.negf %7 : vector<8x32xf32>
    %9 = math.exp %8 : vector<8x32xf32>
    %cst_7 = arith.constant 1.000000e+00 : f32
    %10 = vector.broadcast %cst_7 : f32 to vector<8x32xf32>
    %11 = arith.addf %10, %9 : vector<8x32xf32>
    %12 = arith.divf %10, %11 : vector<8x32xf32>
    %13 = vector.extract_strided_slice %6 {offsets = [0, 32], sizes = [8, 32], strides = [1, 1]} : vector<8x128xf32> to vector<8x32xf32>
    %14 = arith.negf %13 : vector<8x32xf32>
    %15 = math.exp %14 : vector<8x32xf32>
    %cst_8 = arith.constant 1.000000e+00 : f32
    %16 = vector.broadcast %cst_8 : f32 to vector<8x32xf32>
    %17 = arith.addf %16, %15 : vector<8x32xf32>
    %18 = arith.divf %16, %17 : vector<8x32xf32>
    %19 = vector.extract_strided_slice %6 {offsets = [0, 64], sizes = [8, 32], strides = [1, 1]} : vector<8x128xf32> to vector<8x32xf32>
    %20 = vector.extract_strided_slice %6 {offsets = [0, 96], sizes = [8, 32], strides = [1, 1]} : vector<8x128xf32> to vector<8x32xf32>
    %21 = arith.mulf %12, %20 : vector<8x32xf32>
    %22 = arith.addf %19, %21 : vector<8x32xf32>
    %23 = math.tanh %22 : vector<8x32xf32>
    %cst_9 = arith.constant 1.000000e+00 : f32
    %24 = vector.broadcast %cst_9 : f32 to vector<8x32xf32>
    %25 = arith.subf %24, %18 : vector<8x32xf32>
    %26 = arith.mulf %25, %23 : vector<8x32xf32>
    %27 = arith.mulf %18, %1 : vector<8x32xf32>
    %28 = arith.addf %26, %27 : vector<8x32xf32>
    %c0_10 = arith.constant 0 : index
    %c0_11 = arith.constant 0 : index
    %29 = vector.load %arg5[%c0_10, %c0_11] : memref<8x32xf32, #tpu.memory_space<vmem>>, vector<8x32xf32>
    tpu.vector_store %arg5[%c0_10, %c0_11], %28 {strides = array<i32>} : memref<8x32xf32, #tpu.memory_space<vmem>>, vector<8x32xf32>,
    return
  }
  func.func @transform_0(%arg0: i32) -> (i32, i32) {
    %c0_i32 = arith.constant 0 : i32
    %c0_i32_0 = arith.constant 0 : i32
    return %arg0, %c0_i32 : i32, i32
  }
  func.func @transform_1(%arg0: i32) -> (i32, i32) {
    %c0_i32 = arith.constant 0 : i32
    %c0_i32_0 = arith.constant 0 : i32
    return %arg0, %c0_i32 : i32, i32
  }
  func.func @transform_2(%arg0: i32) -> (i32, i32) {
    %c0_i32 = arith.constant 0 : i32
    %c0_i32_0 = arith.constant 0 : i32
    %c0_i32_1 = arith.constant 0 : i32
    return %c0_i32, %c0_i32_0 : i32, i32
  }
  func.func @transform_3(%arg0: i32) -> (i32, i32) {
    %c0_i32 = arith.constant 0 : i32
    %c0_i32_0 = arith.constant 0 : i32
    %c0_i32_1 = arith.constant 0 : i32
    return %c0_i32, %c0_i32_0 : i32, i32
  }
  func.func @transform_4(%arg0: i32) -> (i32, i32) {
    %c0_i32 = arith.constant 0 : i32
    %c0_i32_0 = arith.constant 0 : i32
    return %arg0, %c0_i32 : i32, i32
  }
}

</mosaic_0001>

<bundles_post_ra>
// kernel: continuous_rnn_converter.1
= control target key start
LH: loop header
LB: loop body
LE: loop exit
PB: predicated region body
PF: predicated region fallthrough
CT: control target
= control target key end

     0   :  { %v189_v0 = vmov 0.0|0.0   ;;  %vm190_vm0 = vmmov 0   ;;  %v191_v4 = vmov 0.0   ;;  %vm35_vm1 = vcmask 1043456   ;;  %s192_s29 = smov 32   ;;  %s247_s2 = inlined_call_operand.vmem [shape: f32[36,128], index: 2, kind: input, shape index: {}]   ;;  %s248_s0 = inlined_call_operand.vmem [shape: f32[8,36], index: 0, kind: input, shape index: {}]   ;;  %s249_s3 = inlined_call_operand.vmem [shape: f32[1,128], index: 3, kind: input, shape index: {}]   ;;  %s250_s1 = inlined_call_operand.vmem [shape: f32[8,32], index: 1, kind: input, shape index: {}]   ;;  %s251_s4 = inlined_call_operand.vmem [shape: f32[8,32], index: 4, kind: output, shape index: {}]  }
   0x1   :  { %171 = vmatprep.subr.bf16.mxu0 %v189_v0  ;;  %v19_v1 = vld [vmem:[%s247_s2] sm:$0xff]  ;;  %v20_v2 = vld [vmem:[%s247_s2 + $0x8] sm:$0xff]  ;;  %v21_v3 = vld [vmem:[%s247_s2 + $0x10] sm:$0xff]  ;;  %168 = vmatprep.mubr.msk.f32.mxu0 %vm190_vm0, %v191_v4  ;;  %vm31_vm2 = vcmask 293888   ;;  %vm142_vm3 = vcmask 261120  }
   0x2   :  { %v172_v5 = vpack.c.bf16 %v20_v2, %v19_v1  ;;  %v22_v6 = vld [vmem:[%s247_s2 + $0x18] sm:$0xff]  ;;  %v23_v8 = vld [vmem:[%s247_s2 + $0x20] sm:$0xf]  ;;  %s194_s2 = smov 96  }
   0x3   :  { %v175_v7 = vpack.c.bf16 %v22_v6, %v21_v3  ;;  %v17_v9 = vld [vmem:[%s248_s0] sm:$0xff]  ;;  %s193_s0 = smov 64  }
   0x4   :  { %173 = vmatpush3.bf16.msra.mxu0 %v172_v5  ;;  %v148_v10 = vld [vmem:[%s249_s3] ss:$0 sm:$0xff] }
   0x5   :  { %174 = vmatprep.subr.bf16.mxu0 %v189_v0  ;;  %v18_v23 = vld [vmem:[%s250_s1] sm:$0xff] }
   0x8   :  { %176 = vmatpush3.bf16.msra.mxu0 %v175_v7 }
   0x9   :  { %166 = vmatprep.subr.mxu0 %v191_v4 }
   0xc   :  { %167 = vmatpush3.msk.msra.mxu0 %vm35_vm1, %v23_v8 }
   0xd   :  { %169 = vmatmul.mubr.msk.f32.vlgmr.msra.gmra.mrb[0].mxu0 %vm31_vm2, %v17_v9 }
  0xe0   :  { %v105_v11 = vpop.f32.mrb[0].mxu0 }
  0xe1   :  { %v106_v12 = vadd.f32 %v148_v10, %v105_v11  ;;  %v170_v13 = vpop.f32.mrb[1].mxu0 }
  0xe3   :  { %116 = vrot.lane.b32.xlu0 %v106_v12, %s192_s29  ;;  %v151_v14 = vmul.f32 -1.442695, %v106_v12 }
  0xe5   :  { %183 = vpow2.f32 %v151_v14 }
  0xef   :  { %v184_v15 = vpop.eup %183 }
  0xf0   :  { %v112_v16 = vadd.f32 1.0, %v184_v15 }
  0xf2   :  { %185 = vrcp.f32 %v112_v16 }
  0xfc   :  { %v186_v17 = vpop.eup %185 }
  0xfd   :  { %v126_v25 = vsub.f32 1.0, %v186_v17 }
 0x155   :  { %v117_v18 = vpop.permute.xlu0 %116 }
 0x156   :  { %v119_v19 = vmul.f32 %v186_v17, %v117_v18 }
 0x158   :  { %121 = vrot.lane.b32.xlu0 %v119_v19, %s193_s0 }
 0x1ca   :  { %v122_v20 = vpop.permute.xlu0 %121 }
 0x1cb   :  { %v124_v21 = vadd.f32 %v122_v20, %v106_v12 }
 0x1cd   :  { %187 = vtanh.f32 %v124_v21 }
 0x1d7   :  { %v188_v22 = vpop.eup %187 }
 0x1d8   :  { %128 = vrot.lane.b32.xlu1 %v188_v22, %s194_s2 }
 0x1dc   :  { %133 = vrot.lane.b32.xlu1 %v18_v23, %s192_s29 }
 0x24a   :  { %v129_v24 = vpop.permute.xlu1 %128 }
 0x24b   :  { %v131_v27 = vmul.f32 %v129_v24, %v126_v25 }
 0x24e   :  { %v134_v26 = vpop.permute.xlu1 %133 }
 0x24f   :  { %v136_v28 = vmul.f32 %v186_v17, %v134_v26 }
 0x251   :  { %v137_v29 = vadd.f32 %v136_v28, %v131_v27 }
 0x253   :  { %139 = vrot.lane.b32.xlu0 %v137_v29, %s194_s2 }
 0x2c5   :  { %v140_v30 = vpop.permute.xlu0 %139 }
 0x2c6   :  { %143 = vst.msk [vmem:[%s251_s4] sm:$0xff] %vm142_vm3, %v140_v30 }

</bundles_post_ra>
